<compile_context>
chip_gen: v6e
topology: v6e:2x2x1
jax: 0.10.0
libtpu: 0.0.40
codegen_flags: <defaults>
</compile_context>

<pallas_src>
import functools

import jax
import jax.numpy as jnp
from jax import lax
from jax.experimental import pallas as pl
from jax.experimental.pallas import tpu as pltpu


def _round_up(x, m):
    return ((x + m - 1) // m) * m


def _bert_intermediate_kernel(x_ref, w_ref, b_ref, o_ref):
    # x_ref: (tm, K)  w_ref: (K, tn)  b_ref: (1, tn)  o_ref: (tm, tn)
    # Native-dtype operands straight into the MXU; accumulate in f32.
    y = jnp.dot(x_ref[...], w_ref[...], preferred_element_type=jnp.float32)
    y = y + b_ref[...].astype(jnp.float32)

    # exact GELU: 0.5 * y * (1 + erf(y / sqrt(2)))
    inv_sqrt2 = jnp.float32(0.7071067811865476)
    y = 0.5 * y * (1.0 + lax.erf(y * inv_sqrt2))

    o_ref[...] = y.astype(o_ref.dtype)


@functools.partial(jax.jit, static_argnames=("tm", "tn"))
def bert_intermediate(hidden_states, weight_kn, bias, *, tm=256, tn=512):
    """hidden_states: (B, S, K); weight_kn: (K, N); bias: (N,) -> (B, S, N)."""
    B, S, K = hidden_states.shape
    K2, N = weight_kn.shape
    assert K == K2
    M = B * S
    dtype = hidden_states.dtype
    itemsize = jnp.dtype(dtype).itemsize

    # Sublane packing for the row (M) dimension of tiles.
    row_pack = {4: 8, 2: 16, 1: 32}.get(itemsize, 8)

    # Effective tiles: cap at the (padded) problem size, keep M a multiple of
    # the sublane pack and N a multiple of 128 lanes (unmasked stores).
    tm_eff = min(tm, _round_up(M, row_pack))
    m_pad = _round_up(M, tm_eff)
    tn_eff = min(tn, _round_up(N, 128))
    n_pad = _round_up(N, tn_eff)

    x2d = hidden_states.reshape(M, K)
    if m_pad != M:
        x2d = jnp.pad(x2d, ((0, m_pad - M), (0, 0)))
    w = weight_kn
    b2d = bias.reshape(1, N)
    if n_pad != N:
        w = jnp.pad(w, ((0, 0), (0, n_pad - N)))
        b2d = jnp.pad(b2d, ((0, 0), (0, n_pad - N)))

    # Explicit VMEM budget derived from the (double-buffered) working set;
    # clamped so it is valid on v5e/v6e (128 MiB) and v7x (64 MiB).
    tile_bytes = (tm_eff * K + K * tn_eff + tm_eff * tn_eff + tn_eff) * itemsize
    vmem_limit = int(min(max(2 * tile_bytes + (1 << 20), 32 << 20), 48 << 20))

    grid = (n_pad // tn_eff, m_pad // tm_eff)  # N outer, M inner: weight block
    #                                            invariant across the inner loop.

    out2d = pl.pallas_call(
        _bert_intermediate_kernel,
        out_shape=jax.ShapeDtypeStruct((m_pad, n_pad), dtype),
        grid_spec=pltpu.PrefetchScalarGridSpec(
            num_scalar_prefetch=0,
            grid=grid,
            in_specs=[
                pl.BlockSpec((tm_eff, K), lambda j, i: (i, 0)),   # x tile
                pl.BlockSpec((K, tn_eff), lambda j, i: (0, j)),   # weight slab
                pl.BlockSpec((1, tn_eff), lambda j, i: (0, j)),   # bias slab
            ],
            out_specs=pl.BlockSpec((tm_eff, tn_eff), lambda j, i: (i, j)),
        ),
        compiler_params=pltpu.CompilerParams(
            dimension_semantics=("parallel", "parallel"),
            vmem_limit_bytes=vmem_limit,
        ),
    )(x2d, w, b2d)

    return out2d[:M, :N].reshape(B, S, N)


def _reference(hidden_states, weight_kn, bias):
    y = jnp.einsum("bsk,kn->bsn", hidden_states, weight_kn) + bias
    return jax.nn.gelu(y, approximate=False)


if __name__ == "__main__":
    # Small BERT-like config: hidden_size=32, intermediate_size=64, dropout (eval).
    B, S, H, I = 2, 8, 32, 64

    key = jax.random.PRNGKey(0)
    kx, kw, kb = jax.random.split(key, 3)

    x = jax.random.normal(kx, (B, S, H), dtype=jnp.float32)
    # Deterministic Linear params; stored as (K, N) = (hidden, intermediate).
    weight_kn = jax.random.normal(kw, (H, I), dtype=jnp.float32) * 0.02
    bias = jax.random.normal(kb, (I,), dtype=jnp.float32) * 0.02

    out = bert_intermediate(x, weight_kn, bias)
    out = jax.block_until_ready(out)

    ref = _reference(x, weight_kn, bias)
    assert out.shape == (B, S, I)
    assert jnp.allclose(out, ref, atol=1e-5, rtol=1e-5), "mismatch vs reference"

    print("KERNEL_OK")
</pallas_src>

<mosaic_0001>
module attributes {stable_mosaic.version = 11 : i64} {
  func.func @_bert_intermediate_kernel(%arg0: i32, %arg1: i32, %arg2: memref<16x32xf32, #tpu.memory_space<vmem>>, %arg3: memref<32x128xf32, #tpu.memory_space<vmem>>, %arg4: memref<1x128xf32, #tpu.memory_space<vmem>>, %arg5: memref<16x128xf32, #tpu.memory_space<vmem>>) attributes {dimension_semantics = [#tpu.dimension_semantics<parallel>, #tpu.dimension_semantics<parallel>], iteration_bounds = array<i64: 1, 1>, scalar_prefetch = 0 : i64, scratch_operands = 0 : i64, tpu.core_type = #tpu.core_type<tc>, window_params = [{transform_indices = @transform_0, window_bounds = array<i64: 16, 32>}, {transform_indices = @transform_1, window_bounds = array<i64: 32, 128>}, {transform_indices = @transform_2, window_bounds = array<i64: 1, 128>}, {transform_indices = @transform_3, window_bounds = array<i64: 16, 128>}]} {
    %c0 = arith.constant 0 : index
    %c0_0 = arith.constant 0 : index
    %0 = vector.load %arg2[%c0, %c0_0] : memref<16x32xf32, #tpu.memory_space<vmem>>, vector<16x32xf32>
    %c0_1 = arith.constant 0 : index
    %c0_2 = arith.constant 0 : index
    %1 = vector.load %arg3[%c0_1, %c0_2] : memref<32x128xf32, #tpu.memory_space<vmem>>, vector<32x128xf32>
    %cst = arith.constant dense<0.000000e+00> : vector<16x128xf32>
    %2 = tpu.matmul %0, %1, %cst {dimension_numbers = #tpu.dot_dimension_numbers<[1], [0], [0], [1], [0, 0, 1, 1], [], []>} : vector<16x32xf32>, vector<32x128xf32>, vector<16x128xf32> -> vector<16x128xf32>
    %c0_3 = arith.constant 0 : index
    %c0_4 = arith.constant 0 : index
    %3 = vector.load %arg4[%c0_3, %c0_4] : memref<1x128xf32, #tpu.memory_space<vmem>>, vector<1x128xf32>
    %4 = vector.broadcast %3 : vector<1x128xf32> to vector<16x128xf32>
    %5 = arith.addf %2, %4 : vector<16x128xf32>
    %cst_5 = arith.constant 5.000000e-01 : f32
    %6 = vector.broadcast %cst_5 : f32 to vector<16x128xf32>
    %7 = arith.mulf %6, %5 : vector<16x128xf32>
    %cst_6 = arith.constant 0.707106769 : f32
    %8 = vector.broadcast %cst_6 : f32 to vector<16x128xf32>
    %9 = arith.mulf %5, %8 : vector<16x128xf32>
    %10 = math.erf %9 : vector<16x128xf32>
    %cst_7 = arith.constant 1.000000e+00 : f32
    %11 = vector.broadcast %cst_7 : f32 to vector<16x128xf32>
    %12 = arith.addf %11, %10 : vector<16x128xf32>
    %13 = arith.mulf %7, %12 : vector<16x128xf32>
    %c0_8 = arith.constant 0 : index
    %c0_9 = arith.constant 0 : index
    %14 = vector.load %arg5[%c0_8, %c0_9] : memref<16x128xf32, #tpu.memory_space<vmem>>, vector<16x128xf32>
    tpu.vector_store %arg5[%c0_8, %c0_9], %13 {strides = array<i32>} : memref<16x128xf32, #tpu.memory_space<vmem>>, vector<16x128xf32>,
    return
  }
  func.func @transform_0(%arg0: i32, %arg1: i32) -> (i32, i32) {
    %c0_i32 = arith.constant 0 : i32
    %c0_i32_0 = arith.constant 0 : i32
    return %arg1, %c0_i32 : i32, i32
  }
  func.func @transform_1(%arg0: i32, %arg1: i32) -> (i32, i32) {
    %c0_i32 = arith.constant 0 : i32
    %c0_i32_0 = arith.constant 0 : i32
    return %c0_i32, %arg0 : i32, i32
  }
  func.func @transform_2(%arg0: i32, %arg1: i32) -> (i32, i32) {
    %c0_i32 = arith.constant 0 : i32
    %c0_i32_0 = arith.constant 0 : i32
    return %c0_i32, %arg0 : i32, i32
  }
  func.func @transform_3(%arg0: i32, %arg1: i32) -> (i32, i32) {
    %c0_i32 = arith.constant 0 : i32
    return %arg1, %arg0 : i32, i32
  }
}

</mosaic_0001>

<bundles_post_ra>
// kernel: bert_intermediate.1
= control target key start
LH: loop header
LB: loop body
LE: loop exit
PB: predicated region body
PF: predicated region fallthrough
CT: control target
= control target key end

     0   :  { %vm27_vm0 = vcmask 261120   ;;  %s198_s1 = inlined_call_operand.vmem [shape: f32[32,128], index: 1, kind: input, shape index: {}]   ;;  %s199_s0 = inlined_call_operand.vmem [shape: f32[16,32], index: 0, kind: input, shape index: {}]   ;;  %s200_s2 = inlined_call_operand.vmem [shape: f32[1,128], index: 2, kind: input, shape index: {}]   ;;  %s201_s3 = inlined_call_operand.vmem [shape: f32[16,128], index: 3, kind: output, shape index: {}]  }
   0x1   :  { %v19_v0 = vld [vmem:[%s198_s1 + $0x18] sm:$0xff]  ;;  %v18_v1 = vld [vmem:[%s198_s1 + $0x10] sm:$0xff]  ;;  %v14_v2 = vld [vmem:[%s199_s0] sm:$0xff] }
   0x2   :  { %134 = vmatprep.subr.mxu0 %v19_v0  ;;  %v17_v3 = vld [vmem:[%s198_s1 + $0x8] sm:$0xff]  ;;  %142 = vmatprep.mubr.msk.f32.mxu0 %vm27_vm0, %v14_v2  ;;  %v16_v4 = vld [vmem:[%s198_s1] sm:$0xff] }
   0x3   :  { %135 = vmatpush3.msra.mxu0 %v19_v0  ;;  %v15_v5 = vld [vmem:[%s199_s0 + $0x8] sm:$0xff]  ;;  %v125_v6 = vld [vmem:[%s200_s2] ss:$0 sm:$0xff] }
   0x4   :  { %136 = vmatprep.subr.mxu0 %v18_v1 }
   0x5   :  { %137 = vmatpush3.msra.mxu0 %v18_v1 }
   0x6   :  { %138 = vmatprep.subr.mxu0 %v17_v3 }
   0x7   :  { %139 = vmatpush3.msra.mxu0 %v17_v3 }
   0x8   :  { %140 = vmatprep.subr.mxu0 %v16_v4 }
   0x9   :  { %141 = vmatpush3.msra.mxu0 %v16_v4 }
   0xa   :  { %143 = vmatmul.mubr.msk.f32.vlgmr.msra.gmra.mxu0 %vm27_vm0, %v15_v5 }
  0xca   :  { %v144_v7 = vpop.f32.mrf.mxu0 }
  0xcb   :  { %v106_v8 = vadd.f32 %v144_v7, %v125_v6 }
  0xcc   :  { %v100_v9 = vpop.f32.mrf.mxu0 }
  0xcd   :  { %v112_v10 = vmul.f32 0.70710677, %v106_v8  ;;  %v101_v11 = vadd.f32 %v125_v6, %v100_v9  ;;  %v110_v14 = vmul.f32 0.5, %v106_v8 }
  0xcf   :  { %145 = verf.f32 %v112_v10  ;;  %v111_v12 = vmul.f32 0.70710677, %v101_v11  ;;  %v109_v18 = vmul.f32 0.5, %v101_v11 }
  0xd1   :  { %147 = verf.f32 %v111_v12 }
  0xdc   :  { %v146_v13 = vpop.eup %145 }
  0xdd   :  { %v116_v15 = vadd.f32 1.0, %v146_v13 }
  0xde   :  { %v148_v16 = vpop.eup %147 }
  0xdf   :  { %v118_v17 = vmul.f32 %v116_v15, %v110_v14  ;;  %v115_v19 = vadd.f32 1.0, %v148_v16 }
  0xe1   :  { %120 = vst [vmem:[%s201_s3 + $0x8] sm:$0xff] %v118_v17  ;;  %v117_v20 = vmul.f32 %v115_v19, %v109_v18 }
  0xe3   :  { %119 = vst [vmem:[%s201_s3] sm:$0xff] %v117_v20 }

</bundles_post_ra>
